<compile_context>
chip_gen: v5e
topology: v5e:2x2
jax: 0.10.0
libtpu: 0.0.40
codegen_flags: <defaults>
</compile_context>

<pallas_src>
import functools

import jax
import jax.numpy as jnp
from jax.experimental import pallas as pl
from jax.experimental.pallas import tpu as pltpu

D_IN, D_H1, D_H2, D_H2_PAD, D_OUT = 768, 256, 64, 128, 1   # 256*3 -> 256 -> 64 -> 1
BATCH = 8                                                   # small, sublane-aligned

_VMEM = pltpu.MemorySpace.VMEM


# ------------------------------ fused MLP kernel -----------------------------
def _mlp_kernel(x_ref, w1_ref, b1_ref, w2_ref, b2_ref, w3_ref, b3_ref, o_ref):
    x = x_ref[...]                                                   # (B, 768) f32

    # fcs1 + ReLU: bf16 MXU inputs, f32 accumulation, f32 bias/ReLU.
    h = jnp.dot(x.astype(jnp.bfloat16), w1_ref[...],
                preferred_element_type=jnp.float32)                  # (B, 256)
    h = jnp.maximum(h + b1_ref[...], 0.0)
    # dropout: identity (eval mode)

    # fcs2 + ReLU (hidden dim zero-padded 64 -> 128; padded cols stay 0).
    h = jnp.dot(h.astype(jnp.bfloat16), w2_ref[...],
                preferred_element_type=jnp.float32)                  # (B, 128)
    h = jnp.maximum(h + b2_ref[...], 0.0)
    # dropout: identity (eval mode)

    # fcs3 (out_features == 1): VPU multiply + lane reduction instead of an
    # N=1 MXU matmul.  Padded w3 lanes are zero so they contribute nothing.
    w3_row = w3_ref[...].astype(jnp.float32)                         # (1, 128)
    y = jnp.sum(h * w3_row, axis=-1, keepdims=True) + b3_ref[...]    # (B, 1)
    o_ref[...] = y.astype(o_ref.dtype)


def mlp_forward(params, x):
    """x: [B, 768] f32  ->  squeezed output (matches torch `out.squeeze()`)."""
    B = x.shape[0]
    flops = 2 * B * (D_IN * D_H1 + D_H1 * D_H2_PAD) + 2 * B * D_H2_PAD
    bytes_accessed = (
        x.size * 4
        + params["w1"].size * 2 + params["w2"].size * 2 + params["w3"].size * 2
        + params["b1"].size * 4 + params["b2"].size * 4 + params["b3"].size * 4
        + B * D_OUT * 4
    )
    out = pl.pallas_call(
        _mlp_kernel,
        out_shape=jax.ShapeDtypeStruct((B, D_OUT), jnp.float32),
        in_specs=[pl.BlockSpec(memory_space=_VMEM) for _ in range(7)],
        out_specs=pl.BlockSpec(memory_space=_VMEM),
        cost_estimate=pl.CostEstimate(
            flops=flops, transcendentals=0, bytes_accessed=bytes_accessed),
    )(x, params["w1"], params["b1"], params["w2"], params["b2"],
      params["w3"], params["b3"])
    return jnp.squeeze(out)


# ------------------------------ parameter init --------------------------------
def init_params(key):
    """PyTorch nn.Linear-style init: U(-1/sqrt(fan_in), 1/sqrt(fan_in)).

    Weights are stored as [in, out] (i.e. torch W transposed) so the kernel
    computes x @ W + b.  Matmul weights are bf16; biases stay f32.  The
    64-wide layer is zero-padded to 128 lanes.
    """
    ks = jax.random.split(key, 6)

    def uni(k, shape, fan_in):
        bound = 1.0 / jnp.sqrt(jnp.float32(fan_in))
        return jax.random.uniform(k, shape, jnp.float32, -bound, bound)

    w1 = uni(ks[0], (D_IN, D_H1), D_IN)
    b1 = uni(ks[1], (1, D_H1), D_IN)
    w2 = uni(ks[2], (D_H1, D_H2), D_H1)
    b2 = uni(ks[3], (1, D_H2), D_H1)
    w3 = uni(ks[4], (D_H2, D_OUT), D_H2)     # (64, 1)
    b3 = uni(ks[5], (1, D_OUT), D_H2)        # (1, 1)

    pad = D_H2_PAD - D_H2
    w2_p = jnp.pad(w2, ((0, 0), (0, pad)))               # (256, 128), cols 64..127 = 0
    b2_p = jnp.pad(b2, ((0, 0), (0, pad)))               # (1, 128)
    w3_row = jnp.pad(w3.T, ((0, 0), (0, pad)))           # (1, 128), lanes 64..127 = 0

    return dict(
        w1=w1.astype(jnp.bfloat16),
        b1=b1,
        w2=w2_p.astype(jnp.bfloat16),
        b2=b2_p,
        w3=w3_row.astype(jnp.bfloat16),
        b3=b3,
    )


def _reference(params, x):
    """Pure-JAX f32 reference using the same (bf16-rounded) weight values."""
    h = jnp.maximum(x @ params["w1"].astype(jnp.float32) + params["b1"], 0.0)
    h = jnp.maximum(h @ params["w2"].astype(jnp.float32).T.T + params["b2"], 0.0)
    y = jnp.sum(h * params["w3"].astype(jnp.float32), axis=-1) + params["b3"][0, 0]
    return y


# ------------------------------------ main -------------------------------------
if __name__ == "__main__":
    key = jax.random.PRNGKey(0)
    k_x, k_p = jax.random.split(key)

    x = jax.random.normal(k_x, (BATCH, D_IN), dtype=jnp.float32)
    params = init_params(k_p)

    fwd = jax.jit(functools.partial(mlp_forward, params))
    out = fwd(x)
    jax.block_until_ready(out)

    assert out.shape == (BATCH,), f"expected ({BATCH},), got {out.shape}"
    assert bool(jnp.all(jnp.isfinite(out))), "non-finite output"

    ref = _reference(params, x)
    assert bool(jnp.allclose(out, ref, rtol=5e-2, atol=5e-2)), (
        f"mismatch vs reference: max |diff| = {float(jnp.max(jnp.abs(out - ref)))}")

    print("KERNEL_OK")
</pallas_src>

<mosaic_0001>
module attributes {stable_mosaic.version = 11 : i64} {
  func.func @_mlp_kernel(%arg0: memref<8x768xf32, #tpu.memory_space<vmem>>, %arg1: memref<768x256xbf16, #tpu.memory_space<vmem>>, %arg2: memref<1x256xf32, #tpu.memory_space<vmem>>, %arg3: memref<256x128xbf16, #tpu.memory_space<vmem>>, %arg4: memref<1x128xf32, #tpu.memory_space<vmem>>, %arg5: memref<1x128xbf16, #tpu.memory_space<vmem>>, %arg6: memref<1x1xf32, #tpu.memory_space<vmem>>, %arg7: memref<8x1xf32, #tpu.memory_space<vmem>>) attributes {dimension_semantics = [], scalar_prefetch = 0 : i64, scratch_operands = 0 : i64, tpu.core_type = #tpu.core_type<tc>} {
    %c0 = arith.constant 0 : index
    %c0_0 = arith.constant 0 : index
    %0 = vector.load %arg0[%c0, %c0_0] : memref<8x768xf32, #tpu.memory_space<vmem>>, vector<8x768xf32>
    %1 = arith.truncf %0 : vector<8x768xf32> to vector<8x768xbf16>
    %c0_1 = arith.constant 0 : index
    %c0_2 = arith.constant 0 : index
    %2 = vector.load %arg1[%c0_1, %c0_2] : memref<768x256xbf16, #tpu.memory_space<vmem>>, vector<768x256xbf16>
    %cst = arith.constant dense<0.000000e+00> : vector<8x256xf32>
    %3 = tpu.matmul %1, %2, %cst {dimension_numbers = #tpu.dot_dimension_numbers<[1], [0], [0], [1], [0, 0, 1, 1], [], []>} : vector<8x768xbf16>, vector<768x256xbf16>, vector<8x256xf32> -> vector<8x256xf32>
    %c0_3 = arith.constant 0 : index
    %c0_4 = arith.constant 0 : index
    %4 = vector.load %arg2[%c0_3, %c0_4] : memref<1x256xf32, #tpu.memory_space<vmem>>, vector<1x256xf32>
    %5 = vector.broadcast %4 : vector<1x256xf32> to vector<8x256xf32>
    %6 = arith.addf %3, %5 : vector<8x256xf32>
    %cst_5 = arith.constant 0.000000e+00 : f32
    %7 = vector.broadcast %cst_5 : f32 to vector<8x256xf32>
    %8 = arith.maximumf %6, %7 : vector<8x256xf32>
    %9 = arith.truncf %8 : vector<8x256xf32> to vector<8x256xbf16>
    %c0_6 = arith.constant 0 : index
    %c0_7 = arith.constant 0 : index
    %10 = vector.load %arg3[%c0_6, %c0_7] : memref<256x128xbf16, #tpu.memory_space<vmem>>, vector<256x128xbf16>
    %cst_8 = arith.constant dense<0.000000e+00> : vector<8x128xf32>
    %11 = tpu.matmul %9, %10, %cst_8 {dimension_numbers = #tpu.dot_dimension_numbers<[1], [0], [0], [1], [0, 0, 1, 1], [], []>} : vector<8x256xbf16>, vector<256x128xbf16>, vector<8x128xf32> -> vector<8x128xf32>
    %c0_9 = arith.constant 0 : index
    %c0_10 = arith.constant 0 : index
    %12 = vector.load %arg4[%c0_9, %c0_10] : memref<1x128xf32, #tpu.memory_space<vmem>>, vector<1x128xf32>
    %13 = vector.broadcast %12 : vector<1x128xf32> to vector<8x128xf32>
    %14 = arith.addf %11, %13 : vector<8x128xf32>
    %cst_11 = arith.constant 0.000000e+00 : f32
    %15 = vector.broadcast %cst_11 : f32 to vector<8x128xf32>
    %16 = arith.maximumf %14, %15 : vector<8x128xf32>
    %c0_12 = arith.constant 0 : index
    %c0_13 = arith.constant 0 : index
    %17 = vector.load %arg5[%c0_12, %c0_13] : memref<1x128xbf16, #tpu.memory_space<vmem>>, vector<1x128xbf16>
    %18 = arith.extf %17 : vector<1x128xbf16> to vector<1x128xf32>
    %19 = vector.broadcast %18 : vector<1x128xf32> to vector<8x128xf32>
    %20 = arith.mulf %16, %19 : vector<8x128xf32>
    %cst_14 = arith.constant dense<0.000000e+00> : vector<8xf32>
    %21 = vector.multi_reduction <add>, %20, %cst_14 [1] : vector<8x128xf32> to vector<8xf32>
    %22 = vector.shape_cast %21 : vector<8xf32> to vector<8x1xf32>
    %c0_15 = arith.constant 0 : index
    %c0_16 = arith.constant 0 : index
    %23 = vector.load %arg6[%c0_15, %c0_16] : memref<1x1xf32, #tpu.memory_space<vmem>>, vector<1x1xf32>
    %24 = vector.broadcast %23 : vector<1x1xf32> to vector<8x1xf32>
    %25 = arith.addf %22, %24 : vector<8x1xf32>
    %c0_17 = arith.constant 0 : index
    %c0_18 = arith.constant 0 : index
    %26 = vector.load %arg7[%c0_17, %c0_18] : memref<8x1xf32, #tpu.memory_space<vmem>>, vector<8x1xf32>
    tpu.vector_store %arg7[%c0_17, %c0_18], %25 {strides = array<i32>} : memref<8x1xf32, #tpu.memory_space<vmem>>, vector<8x1xf32>,
    return
  }
}

</mosaic_0001>

<bundles_post_ra>
// kernel: mlp_forward.1
= control target key start
LH: loop header
LB: loop body
LE: loop exit
PB: predicated region body
PF: predicated region fallthrough
CT: control target
= control target key end

     0   :  { %s1745_s0 = inlined_call_operand.hbm [shape: f32[8,768], index: 0, kind: input, shape index: {}]   ;;  %s1746_s1 = inlined_call_operand.hbm [shape: bf16[768,256], index: 1, kind: input, shape index: {}]   ;;  %s1747_s2 = inlined_call_operand.vmem [shape: f32[1,256], index: 2, kind: input, shape index: {}]   ;;  %s1748_s3 = inlined_call_operand.hbm [shape: bf16[256,128], index: 3, kind: input, shape index: {}]   ;;  %s1749_s4 = inlined_call_operand.vmem [shape: f32[1,128], index: 4, kind: input, shape index: {}]   ;;  %s1750_s5 = inlined_call_operand.vmem [shape: bf16[1,128], index: 5, kind: input, shape index: {}]   ;;  %s1751_s6 = inlined_call_operand.<no memory space> [shape: f32[1,1], index: 6, kind: input, shape index: {}]   ;;  %s1752_s7 = inlined_call_operand.vmem [shape: f32[8,1], index: 7, kind: output, shape index: {}]  }
   0x1   :  { %v12_v0 = vstv %s1751_s6 }
   0x2   :  { %13 = vst [vmem:[#allocation2] sm:$0x1] %v12_v0 }
   0x3   :  { %14 = vsyncpa [#allocation4], 0 }
   0x4   :  { %15 = vsyncpa [#allocation6], 0  ;;  %s31_s28 = sshll.u32 %s1746_s1, 4  ;;  %s1650_s29 = smov [#allocation5]   ;;  %s32_s28 = int_to_ptr.hbm [resolvable:$true] %s31_s28 }
   0x5   :  { %s33_s30 = sshll.u32 %s1650_s29, 4  ;;  %s21_s10 = sshll.u32 %s1745_s0, 4  ;;  %s34_s30 = int_to_ptr.vmem [resolvable:$true] %s33_s30  ;;  %s22_s10 = int_to_ptr.hbm [resolvable:$true] %s21_s10 }
   0x6   :  { %s1651_s11 = smov 128   ;;  %s1652_s12 = smov 8  }
   0x7   :  { %39 = dma.hbm_to_vmem [thread:$0]  %s32_s28, 12288, %s34_s30, [#allocation6], %s1651_s11, %s1651_s11, %s1652_s12  }
   0x8   :  { %s1653_s6 = smov [#allocation3]   ;;  %s46_s16 = sshll.u32 %s1748_s3, 4  ;;  %s47_s16 = int_to_ptr.hbm [resolvable:$true] %s46_s16 }
   0x9   :  { %s23_s13 = sshll.u32 %s1653_s6, 4  ;;  %s1654_s1 = smov [#allocation7]   ;;  %s24_s13 = int_to_ptr.vmem [resolvable:$true] %s23_s13 }
   0xa   :  { %26 = dma.hbm_to_vmem [thread:$0]  %s22_s10, 768, %s24_s13, [#allocation4]  }
   0xb   :  { %s48_s17 = sshll.u32 %s1654_s1, 4  ;;  %s1655_s18 = smov 64   ;;  %s49_s17 = int_to_ptr.vmem [resolvable:$true] %s48_s17 }
   0xc   :  { %s1656_s19 = smov 4  }
   0xd   :  { %54 = dma.hbm_to_vmem [thread:$0]  %s47_s16, 2048, %s49_s17, [#allocation6], %s1655_s18, %s1655_s18, %s1656_s19  }
   0xe   :  { %1646 = dma.done.wait [#allocation4], 768  }
   0xf   :  { %1647 = vsyncadd [#allocation4], 4294966528 }
  0x10   :  { %1648 = dma.done.wait [#allocation6], 14336  }
  0x11   :  { %1649 = vsyncadd [#allocation6], 4294952960  ;;  %v1063_v1 = vld [vmem:[#allocation5 + $0x70] sm:$0xf]  ;;  %v1468_v2 = vld [vmem:[#allocation5 + $0x74] sm:$0xf0] }
  0x12   :  { %v1127_v3 = vld [vmem:[#allocation5 + $0xf0] sm:$0xf]  ;;  %v1064_v4 = vor.u32 %v1468_v2, %v1063_v1  ;;  %v1484_v5 = vld [vmem:[#allocation5 + $0xf4] sm:$0xf0]  ;;  %v1055_v12 = vld [vmem:[#allocation5 + $0x60] sm:$0xf] }
  0x13   :  { %v1191_v6 = vld [vmem:[#allocation5 + $0x170] sm:$0xf]  ;;  %v1500_v7 = vld [vmem:[#allocation5 + $0x174] sm:$0xf0]  ;;  %v1128_v8 = vor.u32 %v1484_v5, %v1127_v3  ;;  %v1466_v14 = vld [vmem:[#allocation5 + $0x64] sm:$0xf0] }
  0x14   :  { %v1192_v9 = vor.u32 %v1500_v7, %v1191_v6  ;;  %v1255_v10 = vld [vmem:[#allocation5 + $0x1f0] sm:$0xf]  ;;  %v1516_v11 = vld [vmem:[#allocation5 + $0x1f4] sm:$0xf0]  ;;  %667 = vmatpush.bf16.msra.mxu0 %v1064_v4  ;;  %v1119_v15 = vld [vmem:[#allocation5 + $0xe0] sm:$0xf]  ;;  %v1056_v17 = vor.u32 %v1466_v14, %v1055_v12 }
  0x15   :  { %v1256_v13 = vor.u32 %v1516_v11, %v1255_v10  ;;  %v1482_v16 = vld [vmem:[#allocation5 + $0xe4] sm:$0xf0]  ;;  %680 = vmatpush.bf16.msra.mxu1 %v1128_v8  ;;  %v1183_v19 = vld [vmem:[#allocation5 + $0x160] sm:$0xf]  ;;  %v1047_v24 = vld [vmem:[#allocation5 + $0x50] sm:$0xf] }
  0x16   :  { %693 = vmatpush.bf16.msra.mxu2 %v1192_v9  ;;  %v1120_v18 = vor.u32 %v1482_v16, %v1119_v15  ;;  %v1498_v20 = vld [vmem:[#allocation5 + $0x164] sm:$0xf0]  ;;  %v1247_v21 = vld [vmem:[#allocation5 + $0x1e0] sm:$0xf]  ;;  %v1464_v25 = vld [vmem:[#allocation5 + $0x54] sm:$0xf0] }
  0x17   :  { %706 = vmatpush.bf16.msra.mxu3 %v1256_v13  ;;  %v1184_v22 = vor.u32 %v1498_v20, %v1183_v19  ;;  %v1514_v23 = vld [vmem:[#allocation5 + $0x1e4] sm:$0xf0]  ;;  %v1111_v27 = vld [vmem:[#allocation5 + $0xd0] sm:$0xf]  ;;  %v1480_v28 = vld [vmem:[#allocation5 + $0xd4] sm:$0xf0]  ;;  %v1048_v30 = vor.u32 %v1464_v25, %v1047_v24 }
  0x18   :  { %v1248_v26 = vor.u32 %v1514_v23, %v1247_v21  ;;  %v1175_v29 = vld [vmem:[#allocation5 + $0x150] sm:$0xf]  ;;  %668 = vmatpush.bf16.msra.mxu0 %v1056_v17  ;;  %v1496_v31 = vld [vmem:[#allocation5 + $0x154] sm:$0xf0]  ;;  %v1112_v34 = vor.u32 %v1480_v28, %v1111_v27  ;;  %v1039_v36 = vld [vmem:[#allocation5 + $0x40] sm:$0xf] }
  0x19   :  { %v1239_v32 = vld [vmem:[#allocation5 + $0x1d0] sm:$0xf]  ;;  %v1512_v33 = vld [vmem:[#allocation5 + $0x1d4] sm:$0xf0]  ;;  %681 = vmatpush.bf16.msra.mxu1 %v1120_v18  ;;  %v1176_v35 = vor.u32 %v1496_v31, %v1175_v29  ;;  %v1462_v37 = vld [vmem:[#allocation5 + $0x44] sm:$0xf0] }
  0x1a   :  { %694 = vmatpush.bf16.msra.mxu2 %v1184_v22  ;;  %v1103_v38 = vld [vmem:[#allocation5 + $0xc0] sm:$0xf]  ;;  %v1240_v39 = vor.u32 %v1512_v33, %v1239_v32  ;;  %v1478_v40 = vld [vmem:[#allocation5 + $0xc4] sm:$0xf0]  ;;  %v1040_v45 = vor.u32 %v1462_v37, %v1039_v36  ;;  %v1031_v48 = vld [vmem:[#allocation5 + $0x30] sm:$0xf] }
  0x1b   :  { %707 = vmatpush.bf16.msra.mxu3 %v1248_v26  ;;  %v1167_v41 = vld [vmem:[#allocation5 + $0x140] sm:$0xf]  ;;  %v1494_v42 = vld [vmem:[#allocation5 + $0x144] sm:$0xf0]  ;;  %v1104_v46 = vor.u32 %v1478_v40, %v1103_v38  ;;  %v1460_v49 = vld [vmem:[#allocation5 + $0x34] sm:$0xf0] }
  0x1c   :  { %v1231_v43 = vld [vmem:[#allocation5 + $0x1c0] sm:$0xf]  ;;  %v1510_v44 = vld [vmem:[#allocation5 + $0x1c4] sm:$0xf0]  ;;  %669 = vmatpush.bf16.msra.mxu0 %v1048_v30  ;;  %v1168_v47 = vor.u32 %v1494_v42, %v1167_v41  ;;  %v1095_v50 = vld [vmem:[#allocation5 + $0xb0] sm:$0xf]  ;;  %v1032_v57 = vor.u32 %v1460_v49, %v1031_v48 }
  0x1d   :  { %682 = vmatpush.bf16.msra.mxu1 %v1112_v34  ;;  %v1232_v51 = vor.u32 %v1510_v44, %v1231_v43  ;;  %v1476_v52 = vld [vmem:[#allocation5 + $0xb4] sm:$0xf0]  ;;  %v1159_v53 = vld [vmem:[#allocation5 + $0x130] sm:$0xf]  ;;  %v1023_v60 = vld [vmem:[#allocation5 + $0x20] sm:$0xf] }
  0x1e   :  { %695 = vmatpush.bf16.msra.mxu2 %v1176_v35  ;;  %v1492_v54 = vld [vmem:[#allocation5 + $0x134] sm:$0xf0]  ;;  %v1223_v55 = vld [vmem:[#allocation5 + $0x1b0] sm:$0xf]  ;;  %v1096_v58 = vor.u32 %v1476_v52, %v1095_v50  ;;  %v1458_v61 = vld [vmem:[#allocation5 + $0x24] sm:$0xf0] }
  0x1f   :  { %708 = vmatpush.bf16.msra.mxu3 %v1240_v39  ;;  %v1508_v56 = vld [vmem:[#allocation5 + $0x1b4] sm:$0xf0]  ;;  %v1160_v59 = vor.u32 %v1492_v54, %v1159_v53  ;;  %v1087_v62 = vld [vmem:[#allocation5 + $0xa0] sm:$0xf]  ;;  %v1474_v0 = vld [vmem:[#allocation5 + $0xa4] sm:$0xf0]  ;;  %v1024_v5 = vor.u32 %v1458_v61, %v1023_v60 }
  0x20   :  { %670 = vmatpush.bf16.msra.mxu0 %v1040_v45  ;;  %v1224_v63 = vor.u32 %v1508_v56, %v1223_v55  ;;  %v1151_v1 = vld [vmem:[#allocation5 + $0x120] sm:$0xf]  ;;  %v1490_v2 = vld [vmem:[#allocation5 + $0x124] sm:$0xf0]  ;;  %v1088_v6 = vor.u32 %v1474_v0, %v1087_v62  ;;  %v1015_v8 = vld [vmem:[#allocation5 + $0x10] sm:$0xf] }
  0x21   :  { %683 = vmatpush.bf16.msra.mxu1 %v1104_v46  ;;  %v1215_v3 = vld [vmem:[#allocation5 + $0x1a0] sm:$0xf]  ;;  %v1506_v4 = vld [vmem:[#allocation5 + $0x1a4] sm:$0xf0]  ;;  %v1152_v7 = vor.u32 %v1490_v2, %v1151_v1  ;;  %v1456_v9 = vld [vmem:[#allocation5 + $0x14] sm:$0xf0] }
  0x22   :  { %696 = vmatpush.bf16.msra.mxu2 %v1168_v47  ;;  %v1079_v10 = vld [vmem:[#allocation5 + $0x90] sm:$0xf]  ;;  %v1216_v11 = vor.u32 %v1506_v4, %v1215_v3  ;;  %v1472_v12 = vld [vmem:[#allocation5 + $0x94] sm:$0xf0]  ;;  %v1016_v17 = vor.u32 %v1456_v9, %v1015_v8  ;;  %v1007_v18 = vld [vmem:[#allocation5] sm:$0xf] }
  0x23   :  { %709 = vmatpush.bf16.msra.mxu3 %v1232_v51  ;;  %v1143_v13 = vld [vmem:[#allocation5 + $0x110] sm:$0xf]  ;;  %v1488_v14 = vld [vmem:[#allocation5 + $0x114] sm:$0xf0]  ;;  %v1454_v19 = vld [vmem:[#allocation5 + $0x4] sm:$0xf0]  ;;  %v1080_v20 = vor.u32 %v1472_v12, %v1079_v10 }
  0x24   :  { %671 = vmatpush.bf16.msra.mxu0 %v1032_v57  ;;  %v1207_v15 = vld [vmem:[#allocation5 + $0x190] sm:$0xf]  ;;  %v1504_v16 = vld [vmem:[#allocation5 + $0x194] sm:$0xf0]  ;;  %v1144_v21 = vor.u32 %v1488_v14, %v1143_v13  ;;  %v1071_v22 = vld [vmem:[#allocation5 + $0x80] sm:$0xf]  ;;  %v1008_v32 = vor.u32 %v1454_v19, %v1007_v18 }
  0x25   :  { %684 = vmatpush.bf16.msra.mxu1 %v1096_v58  ;;  %v1470_v23 = vld [vmem:[#allocation5 + $0x84] sm:$0xf0]  ;;  %v1135_v24 = vld [vmem:[#allocation5 + $0x100] sm:$0xf]  ;;  %v1208_v25 = vor.u32 %v1504_v16, %v1207_v15  ;;  %v1319_v29 = vld [vmem:[#allocation5 + $0x270] sm:$0xf] }
  0x26   :  { %697 = vmatpush.bf16.msra.mxu2 %v1160_v59  ;;  %v1486_v26 = vld [vmem:[#allocation5 + $0x104] sm:$0xf0]  ;;  %v1199_v27 = vld [vmem:[#allocation5 + $0x180] sm:$0xf]  ;;  %v1532_v30 = vld [vmem:[#allocation5 + $0x274] sm:$0xf0]  ;;  %v1072_v36 = vor.u32 %v1470_v23, %v1071_v22 }
  0x27   :  { %710 = vmatpush.bf16.msra.mxu3 %v1224_v63  ;;  %v1502_v28 = vld [vmem:[#allocation5 + $0x184] sm:$0xf0]  ;;  %v1383_v31 = vld [vmem:[#allocation5 + $0x2f0] sm:$0xf]  ;;  %v1548_v33 = vld [vmem:[#allocation5 + $0x2f4] sm:$0xf0]  ;;  %v1136_v37 = vor.u32 %v1486_v26, %v1135_v24  ;;  %v1320_v41 = vor.u32 %v1532_v30, %v1319_v29 }
  0x28   :  { %672 = vmatpush.bf16.msra.mxu0 %v1024_v5  ;;  %v1467_v34 = vld [vmem:[#allocation5 + $0x74] sm:$0xf]  ;;  %v1065_v35 = vld [vmem:[#allocation5 + $0x78] sm:$0xf0]  ;;  %v1200_v40 = vor.u32 %v1502_v28, %v1199_v27  ;;  %v1384_v42 = vor.u32 %v1548_v33, %v1383_v31  ;;  %v1311_v44 = vld [vmem:[#allocation5 + $0x260] sm:$0xf] }
  0x29   :  { %685 = vmatpush.bf16.msra.mxu1 %v1088_v6  ;;  %v1483_v38 = vld [vmem:[#allocation5 + $0xf4] sm:$0xf]  ;;  %v1129_v39 = vld [vmem:[#allocation5 + $0xf8] sm:$0xf0]  ;;  %v1068_v43 = vor.u32 %v1467_v34, %v1065_v35  ;;  %v1530_v45 = vld [vmem:[#allocation5 + $0x264] sm:$0xf0] }
  0x2a   :  { %698 = vmatpush.bf16.msra.mxu2 %v1152_v7  ;;  %v1375_v46 = vld [vmem:[#allocation5 + $0x2e0] sm:$0xf]  ;;  %v1132_v47 = vor.u32 %v1483_v38, %v1129_v39  ;;  %v1546_v48 = vld [vmem:[#allocation5 + $0x2e4] sm:$0xf0]  ;;  %v1465_v49 = vld [vmem:[#allocation5 + $0x64] sm:$0xf]  ;;  %v1312_v54 = vor.u32 %v1530_v45, %v1311_v44 }
  0x2b   :  { %711 = vmatpush.bf16.msra.mxu3 %v1216_v11  ;;  %v1057_v50 = vld [vmem:[#allocation5 + $0x68] sm:$0xf0]  ;;  %v1481_v51 = vld [vmem:[#allocation5 + $0xe4] sm:$0xf]  ;;  %v73_v53 = vld [vmem:[#allocation3] sm:$0xff]  ;;  %v1376_v58 = vor.u32 %v1546_v48, %v1375_v46  ;;  %vm997_vm0 = vcmask 7168  }
  0x2c   :  { %673 = vmatpush.bf16.msra.mxu0 %v1016_v17  ;;  %v1121_v52 = vld [vmem:[#allocation5 + $0xe8] sm:$0xf0]  ;;  %v1303_v55 = vld [vmem:[#allocation5 + $0x250] sm:$0xf]  ;;  %v1528_v56 = vld [vmem:[#allocation5 + $0x254] sm:$0xf0]  ;;  %v1709_v57 = vpack.c.bf16 %v73_v53, %v73_v53  ;;  %v1060_v59 = vor.u32 %v1465_v49, %v1057_v50 }
  0x2d   :  { %686 = vmatpush.bf16.msra.mxu1 %v1080_v20  ;;  %v1367_v60 = vld [vmem:[#allocation5 + $0x2d0] sm:$0xf]  ;;  %v1544_v61 = vld [vmem:[#allocation5 + $0x2d4] sm:$0xf0]  ;;  %v1463_v62 = vld [vmem:[#allocation5 + $0x54] sm:$0xf]  ;;  %v1124_v63 = vor.u32 %v1481_v51, %v1121_v52  ;;  %v1304_v7 = vor.u32 %v1528_v56, %v1303_v55 }
  0x2e   :  { %699 = vmatpush.bf16.msra.mxu2 %v1144_v21  ;;  %v1049_v0 = vld [vmem:[#allocation5 + $0x58] sm:$0xf0]  ;;  %v75_v2 = vld [vmem:[#allocation3 + $0x10] sm:$0xff]  ;;  %v1479_v3 = vld [vmem:[#allocation5 + $0xd4] sm:$0xf]  ;;  %v1368_v9 = vor.u32 %v1544_v61, %v1367_v60 }
  0x2f   :  { %712 = vmatpush.bf16.msra.mxu3 %v1208_v25  ;;  %v74_v1 = vld [vmem:[#allocation3 + $0x8] sm:$0xff]  ;;  %v1714_v6 = vpack.c.bf16 %v75_v2, %v75_v2  ;;  %v1295_v8 = vld [vmem:[#allocation5 + $0x240] sm:$0xf]  ;;  %v1052_v10 = vor.u32 %v1463_v62, %v1049_v0  ;;  %v1526_v11 = vld [vmem:[#allocation5 + $0x244] sm:$0xf0] }
  0x30   :  { %674 = vmatpush.bf16.msra.mxu0 %v1008_v32  ;;  %v1113_v4 = vld [vmem:[#allocation5 + $0xd8] sm:$0xf0]  ;;  %v1712_v5 = vpack.c.bf16 %v74_v1, %v74_v1  ;;  %v1359_v12 = vld [vmem:[#allocation5 + $0x2c0] sm:$0xf]  ;;  %v76_v13 = vld [vmem:[#allocation3 + $0x18] sm:$0xff]  ;;  %v1296_v21 = vor.u32 %v1526_v11, %v1295_v8 }
  0x31   :  { %687 = vmatpush.bf16.msra.mxu1 %v1072_v36  ;;  %v1116_v14 = vor.u32 %v1479_v3, %v1113_v4  ;;  %v1542_v15 = vld [vmem:[#allocation5 + $0x2c4] sm:$0xf0]  ;;  %v1461_v16 = vld [vmem:[#allocation5 + $0x44] sm:$0xf]  ;;  %v1041_v17 = vld [vmem:[#allocation5 + $0x48] sm:$0xf0]  ;;  %v1717_v18 = vpack.c.bf16 %v76_v13, %v76_v13 }
  0x32   :  { %700 = vmatpush.bf16.msra.mxu2 %v1136_v37  ;;  %v1477_v19 = vld [vmem:[#allocation5 + $0xc4] sm:$0xf]  ;;  %v1105_v20 = vld [vmem:[#allocation5 + $0xc8] sm:$0xf0]  ;;  %v1360_v22 = vor.u32 %v1542_v15, %v1359_v12  ;;  %v1044_v23 = vor.u32 %v1461_v16, %v1041_v17  ;;  %v1287_v24 = vld [vmem:[#allocation5 + $0x230] sm:$0xf] }
  0x33   :  { %713 = vmatpush.bf16.msra.mxu3 %v1200_v40  ;;  %675 = vmatmul.bf16.vlgmr.msra.gmra.mxu0 %v1709_v57  ;;  %v1524_v25 = vld [vmem:[#allocation5 + $0x234] sm:$0xf0]  ;;  %v1351_v26 = vld [vmem:[#allocation5 + $0x2b0] sm:$0xf]  ;;  %v1108_v27 = vor.u32 %v1477_v19, %v1105_v20  ;;  %v1459_v29 = vld [vmem:[#allocation5 + $0x34] sm:$0xf] }
  0x34   :  { %719 = vmatpush.bf16.msrb.mxu0 %v1320_v41  ;;  %688 = vmatmul.bf16.vlgmr.msra.gmra.mxu1 %v1712_v5  ;;  %v1540_v28 = vld [vmem:[#allocation5 + $0x2b4] sm:$0xf0]  ;;  %v1033_v30 = vld [vmem:[#allocation5 + $0x38] sm:$0xf0]  ;;  %v1475_v31 = vld [vmem:[#allocation5 + $0xb4] sm:$0xf]  ;;  %v1288_v33 = vor.u32 %v1524_v25, %v1287_v24 }
  0x35   :  { %732 = vmatpush.bf16.msrb.mxu1 %v1384_v42  ;;  %701 = vmatmul.bf16.vlgmr.msra.gmra.mxu2 %v1714_v6  ;;  %v1097_v32 = vld [vmem:[#allocation5 + $0xb8] sm:$0xf0]  ;;  %v1352_v34 = vor.u32 %v1540_v28, %v1351_v26  ;;  %v1036_v35 = vor.u32 %v1459_v29, %v1033_v30  ;;  %v1279_v36 = vld [vmem:[#allocation5 + $0x220] sm:$0xf]  ;;  %v1522_v37 = vld [vmem:[#allocation5 + $0x224] sm:$0xf0] }
  0x36   :  { %745 = vmatpush.bf16.msrb.mxu2 %v1068_v43  ;;  %714 = vmatmul.bf16.vlgmr.msra.gmra.mxu3 %v1717_v18  ;;  %v1343_v38 = vld [vmem:[#allocation5 + $0x2a0] sm:$0xf]  ;;  %v1100_v39 = vor.u32 %v1475_v31, %v1097_v32  ;;  %v1538_v40 = vld [vmem:[#allocation5 + $0x2a4] sm:$0xf0]  ;;  %v1457_v41 = vld [vmem:[#allocation5 + $0x24] sm:$0xf]  ;;  %v1280_v45 = vor.u32 %v1522_v37, %v1279_v36 }
  0x37   :  { %758 = vmatpush.bf16.msrb.mxu3 %v1132_v47  ;;  %v1025_v42 = vld [vmem:[#allocation5 + $0x28] sm:$0xf0]  ;;  %v1473_v43 = vld [vmem:[#allocation5 + $0xa4] sm:$0xf]  ;;  %v1344_v46 = vor.u32 %v1538_v40, %v1343_v38  ;;  %v1271_v48 = vld [vmem:[#allocation5 + $0x210] sm:$0xf] }
  0x38   :  { %720 = vmatpush.bf16.msrb.mxu0 %v1312_v54  ;;  %v1089_v44 = vld [vmem:[#allocation5 + $0xa8] sm:$0xf0]  ;;  %v1028_v47 = vor.u32 %v1457_v41, %v1025_v42  ;;  %v1520_v49 = vld [vmem:[#allocation5 + $0x214] sm:$0xf0]  ;;  %v1335_v50 = vld [vmem:[#allocation5 + $0x290] sm:$0xf] }
  0x39   :  { %733 = vmatpush.bf16.msrb.mxu1 %v1376_v58  ;;  %v1092_v51 = vor.u32 %v1473_v43, %v1089_v44  ;;  %v1536_v52 = vld [vmem:[#allocation5 + $0x294] sm:$0xf0]  ;;  %v1455_v53 = vld [vmem:[#allocation5 + $0x14] sm:$0xf]  ;;  %v1017_v54 = vld [vmem:[#allocation5 + $0x18] sm:$0xf0]  ;;  %v1272_v58 = vor.u32 %v1520_v49, %v1271_v48 }
  0x3a   :  { %746 = vmatpush.bf16.msrb.mxu2 %v1060_v59  ;;  %v1471_v55 = vld [vmem:[#allocation5 + $0x94] sm:$0xf]  ;;  %v1081_v56 = vld [vmem:[#allocation5 + $0x98] sm:$0xf0]  ;;  %v1263_v59 = vld [vmem:[#allocation5 + $0x200] sm:$0xf]  ;;  %v1336_v61 = vor.u32 %v1536_v52, %v1335_v50  ;;  %v1020_v62 = vor.u32 %v1455_v53, %v1017_v54 }
  0x3b   :  { %759 = vmatpush.bf16.msrb.mxu3 %v1124_v63  ;;  %v1518_v60 = vld [vmem:[#allocation5 + $0x204] sm:$0xf0]  ;;  %v1327_v63 = vld [vmem:[#allocation5 + $0x280] sm:$0xf]  ;;  %v1453_v1 = vld [vmem:[#allocation5 + $0x4] sm:$0xf]  ;;  %v1084_v2 = vor.u32 %v1471_v55, %v1081_v56 }
  0x3c   :  { %721 = vmatpush.bf16.msrb.mxu0 %v1304_v7  ;;  %v1534_v0 = vld [vmem:[#allocation5 + $0x284] sm:$0xf0]  ;;  %v1009_v3 = vld [vmem:[#allocation5 + $0x8] sm:$0xf0]  ;;  %v1469_v4 = vld [vmem:[#allocation5 + $0x84] sm:$0xf]  ;;  %v1264_v11 = vor.u32 %v1518_v60, %v1263_v59 }
  0x3d   :  { %734 = vmatpush.bf16.msrb.mxu1 %v1368_v9  ;;  %v1073_v7 = vld [vmem:[#allocation5 + $0x88] sm:$0xf0]  ;;  %v1499_v8 = vld [vmem:[#allocation5 + $0x174] sm:$0xf]  ;;  %v1193_v9 = vld [vmem:[#allocation5 + $0x178] sm:$0xf0]  ;;  %v1328_v15 = vor.u32 %v1534_v0, %v1327_v63  ;;  %v1012_v16 = vor.u32 %v1453_v1, %v1009_v3 }
  0x3e   :  { %747 = vmatpush.bf16.msrb.mxu2 %v1052_v10  ;;  %v1515_v10 = vld [vmem:[#allocation5 + $0x1f4] sm:$0xf]  ;;  %v1257_v12 = vld [vmem:[#allocation5 + $0x1f8] sm:$0xf0]  ;;  %v1497_v26 = vld [vmem:[#allocation5 + $0x164] sm:$0xf] }
  0x3f   :  { %760 = vmatpush.bf16.msrb.mxu3 %v1116_v14  ;;  %v1531_v13 = vld [vmem:[#allocation5 + $0x274] sm:$0xf]  ;;  %v1321_v14 = vld [vmem:[#allocation5 + $0x278] sm:$0xf0]  ;;  %v1260_v24 = vor.u32 %v1515_v10, %v1257_v12  ;;  %v1513_v28 = vld [vmem:[#allocation5 + $0x1e4] sm:$0xf] }
  0x40   :  { %722 = vmatpush.bf16.msrb.mxu0 %v1296_v21  ;;  %v1547_v17 = vld [vmem:[#allocation5 + $0x2f4] sm:$0xf]  ;;  %v1385_v19 = vld [vmem:[#allocation5 + $0x2f8] sm:$0xf0]  ;;  %v1076_v21 = vor.u32 %v1469_v4, %v1073_v7  ;;  %v1324_v25 = vor.u32 %v1531_v13, %v1321_v14  ;;  %v1249_v31 = vld [vmem:[#allocation5 + $0x1e8] sm:$0xf0] }
  0x41   :  { %735 = vmatpush.bf16.msrb.mxu1 %v1360_v22  ;;  %v77_v20 = vld [vmem:[#allocation3 + $0x20] sm:$0xff]  ;;  %v1196_v22 = vor.u32 %v1499_v8, %v1193_v9  ;;  %v1388_v29 = vor.u32 %v1547_v17, %v1385_v19  ;;  %v1529_v32 = vld [vmem:[#allocation5 + $0x264] sm:$0xf]  ;;  %v1377_v36 = vld [vmem:[#allocation5 + $0x2e8] sm:$0xf0]  ;;  %v1252_v38 = vor.u32 %v1513_v28, %v1249_v31 }
  0x42   :  { %748 = vmatpush.bf16.msrb.mxu2 %v1044_v23  ;;  %v78_v23 = vld [vmem:[#allocation3 + $0x28] sm:$0xff]  ;;  %v1721_v30 = vpack.c.bf16 %v77_v20, %v77_v20  ;;  %v1495_v40 = vld [vmem:[#allocation5 + $0x154] sm:$0xf]  ;;  %v1493_v52 = vld [vmem:[#allocation5 + $0x144] sm:$0xf] }
  0x43   :  { %761 = vmatpush.bf16.msrb.mxu3 %v1108_v27  ;;  %v1185_v27 = vld [vmem:[#allocation5 + $0x168] sm:$0xf0]  ;;  %v1177_v41 = vld [vmem:[#allocation5 + $0x158] sm:$0xf0]  ;;  %v1511_v42 = vld [vmem:[#allocation5 + $0x1d4] sm:$0xf] }
  0x44   :  { %723 = vmatpush.bf16.msrb.mxu0 %v1288_v33  ;;  %v1313_v33 = vld [vmem:[#allocation5 + $0x268] sm:$0xf0]  ;;  %v1188_v37 = vor.u32 %v1497_v26, %v1185_v27  ;;  %v1241_v44 = vld [vmem:[#allocation5 + $0x1d8] sm:$0xf0]  ;;  %v1180_v49 = vor.u32 %v1495_v40, %v1177_v41  ;;  %v1509_v54 = vld [vmem:[#allocation5 + $0x1c4] sm:$0xf] }
  0x45   :  { %736 = vmatpush.bf16.msrb.mxu1 %v1352_v34  ;;  %v1723_v34 = vpack.c.bf16 %v78_v23, %v78_v23  ;;  %v1369_v48 = vld [vmem:[#allocation5 + $0x2d8] sm:$0xf0]  ;;  %v1244_v50 = vor.u32 %v1511_v42, %v1241_v44  ;;  %v1169_v53 = vld [vmem:[#allocation5 + $0x148] sm:$0xf0]  ;;  %v1541_v60 = vld [vmem:[#allocation5 + $0x2c4] sm:$0xf] }
  0x46   :  { %749 = vmatpush.bf16.msrb.mxu2 %v1036_v35  ;;  %v1545_v35 = vld [vmem:[#allocation5 + $0x2e4] sm:$0xf]  ;;  %v1233_v56 = vld [vmem:[#allocation5 + $0x1c8] sm:$0xf0]  ;;  %v1491_v63 = vld [vmem:[#allocation5 + $0x134] sm:$0xf] }
  0x47   :  { %762 = vmatpush.bf16.msrb.mxu3 %v1100_v39  ;;  %v1316_v39 = vor.u32 %v1529_v32, %v1313_v33  ;;  %v1380_v43 = vor.u32 %v1545_v35, %v1377_v36  ;;  %v1297_v59 = vld [vmem:[#allocation5 + $0x248] sm:$0xf0]  ;;  %v1161_v0 = vld [vmem:[#allocation5 + $0x138] sm:$0xf0]  ;;  %v1507_v1 = vld [vmem:[#allocation5 + $0x1b4] sm:$0xf] }
  0x48   :  { %724 = vmatpush.bf16.msrb.mxu0 %v1280_v45  ;;  %v1527_v45 = vld [vmem:[#allocation5 + $0x254] sm:$0xf]  ;;  %v1225_v3 = vld [vmem:[#allocation5 + $0x1b8] sm:$0xf0]  ;;  %v1164_v10 = vor.u32 %v1491_v63, %v1161_v0  ;;  %v1489_v13 = vld [vmem:[#allocation5 + $0x124] sm:$0xf] }
  0x49   :  { %737 = vmatpush.bf16.msrb.mxu1 %v1344_v46  ;;  %v1305_v46 = vld [vmem:[#allocation5 + $0x258] sm:$0xf0]  ;;  %v1523_v4 = vld [vmem:[#allocation5 + $0x234] sm:$0xf]  ;;  %v1153_v14 = vld [vmem:[#allocation5 + $0x128] sm:$0xf0] }
  0x4a   :  { %750 = vmatpush.bf16.msrb.mxu2 %v1028_v47  ;;  %v1543_v47 = vld [vmem:[#allocation5 + $0x2d4] sm:$0xf]  ;;  %v1289_v7 = vld [vmem:[#allocation5 + $0x238] sm:$0xf0]  ;;  %v1217_v17 = vld [vmem:[#allocation5 + $0x1a8] sm:$0xf0]  ;;  %v1156_v23 = vor.u32 %v1489_v13, %v1153_v14 }
  0x4b   :  { %763 = vmatpush.bf16.msrb.mxu3 %v1092_v51  ;;  %v1308_v51 = vor.u32 %v1527_v45, %v1305_v46  ;;  %v1372_v55 = vor.u32 %v1543_v47, %v1369_v48  ;;  %v1539_v8 = vld [vmem:[#allocation5 + $0x2b4] sm:$0xf]  ;;  %v1353_v9 = vld [vmem:[#allocation5 + $0x2b8] sm:$0xf0]  ;;  %v1292_v12 = vor.u32 %v1523_v4, %v1289_v7  ;;  %v1521_v19 = vld [vmem:[#allocation5 + $0x224] sm:$0xf] }
  0x4c   :  { %725 = vmatpush.bf16.msrb.mxu0 %v1272_v58  ;;  %v1525_v58 = vld [vmem:[#allocation5 + $0x244] sm:$0xf]  ;;  %v1281_v20 = vld [vmem:[#allocation5 + $0x228] sm:$0xf0]  ;;  %v1487_v26 = vld [vmem:[#allocation5 + $0x114] sm:$0xf] }
  0x4d   :  { %738 = vmatpush.bf16.msrb.mxu1 %v1336_v61  ;;  %v1172_v61 = vor.u32 %v1493_v52, %v1169_v53  ;;  %v1145_v27 = vld [vmem:[#allocation5 + $0x118] sm:$0xf0]  ;;  %v1503_v28 = vld [vmem:[#allocation5 + $0x194] sm:$0xf]  ;;  %v1485_v40 = vld [vmem:[#allocation5 + $0x104] sm:$0xf] }
  0x4e   :  { %751 = vmatpush.bf16.msrb.mxu2 %v1020_v62  ;;  %v1236_v62 = vor.u32 %v1509_v54, %v1233_v56  ;;  %v1209_v31 = vld [vmem:[#allocation5 + $0x198] sm:$0xf0]  ;;  %v1519_v32 = vld [vmem:[#allocation5 + $0x214] sm:$0xf]  ;;  %v1137_v41 = vld [vmem:[#allocation5 + $0x108] sm:$0xf0] }
  0x4f   :  { %764 = vmatpush.bf16.msrb.mxu3 %v1084_v2  ;;  %v1273_v33 = vld [vmem:[#allocation5 + $0x218] sm:$0xf0]  ;;  %v1535_v35 = vld [vmem:[#allocation5 + $0x294] sm:$0xf]  ;;  %v1501_v42 = vld [vmem:[#allocation5 + $0x184] sm:$0xf] }
  0x50   :  { %726 = vmatpush.bf16.msrb.mxu0 %v1264_v11  ;;  %v1228_v11 = vor.u32 %v1507_v1, %v1225_v3  ;;  %v1337_v36 = vld [vmem:[#allocation5 + $0x298] sm:$0xf0]  ;;  %v1201_v44 = vld [vmem:[#allocation5 + $0x188] sm:$0xf0]  ;;  %v1517_v45 = vld [vmem:[#allocation5 + $0x204] sm:$0xf] }
  0x51   :  { %739 = vmatpush.bf16.msrb.mxu1 %v1328_v15  ;;  %v1505_v15 = vld [vmem:[#allocation5 + $0x1a4] sm:$0xf]  ;;  %v1265_v46 = vld [vmem:[#allocation5 + $0x208] sm:$0xf0]  ;;  %v1556_v53 = vld [vmem:[#allocation7 + $0x38] sm:$0xff] }
  0x52   :  { %752 = vmatpush.bf16.msrb.mxu2 %v1012_v16  ;;  %v1356_v16 = vor.u32 %v1539_v8, %v1353_v9  ;;  %v1533_v47 = vld [vmem:[#allocation5 + $0x284] sm:$0xf]  ;;  %v1329_v48 = vld [vmem:[#allocation5 + $0x288] sm:$0xf0]  ;;  %v1555_v54 = vld [vmem:[#allocation7 + $0x30] sm:$0xff] }
  0x53   :  { %765 = vmatpush.bf16.msrb.mxu3 %v1076_v21  ;;  %727 = vmatmul.bf16.vlgmr.msrb.gmra.mxu0 %v1721_v30  ;;  %v1537_v21 = vld [vmem:[#allocation5 + $0x2a4] sm:$0xf]  ;;  %v1332_v52 = vor.u32 %v1533_v47, %v1329_v48  ;;  %v1559_v14 = vld [vmem:[#allocation7 + $0x50] sm:$0xff] }
  0x54   :  { %771 = vmatpush.bf16.msra.mxu0 %v1196_v22  ;;  %740 = vmatmul.bf16.vlgmr.msrb.gmra.mxu1 %v1723_v34  ;;  %v1345_v22 = vld [vmem:[#allocation5 + $0x2a8] sm:$0xf0]  ;;  %v1553_v56 = vld [vmem:[#allocation7 + $0x20] sm:$0xff] }
  0x55   :  { %784 = vmatpush.bf16.msra.mxu1 %v1260_v24  ;;  %753 = vmatmul.bf16.vlgmr.msrb.gmra.mxu2 %v1709_v57  ;;  %v1361_v57 = vld [vmem:[#allocation5 + $0x2c8] sm:$0xf0]  ;;  %v1220_v24 = vor.u32 %v1505_v15, %v1217_v17  ;;  %v1561_v4 = vld [vmem:[#allocation7 + $0x60] sm:$0xff] }
  0x56   :  { %797 = vmatpush.bf16.msra.mxu2 %v1324_v25  ;;  %766 = vmatmul.bf16.vlgmr.msrb.gmra.mxu3 %v1712_v5  ;;  %v1300_v5 = vor.u32 %v1525_v58, %v1297_v59  ;;  %v1364_v2 = vor.u32 %v1541_v60, %v1361_v57  ;;  %v1284_v25 = vor.u32 %v1521_v19, %v1281_v20  ;;  %v1552_v58 = vld [vmem:[#allocation7 + $0x18] sm:$0xff]  ;;  %v1551_v59 = vld [vmem:[#allocation7 + $0x10] sm:$0xff]  ;;  %v1550_v57 = vld [vmem:[#allocation7 + $0x8] sm:$0xff] }
  0x57   :  { %810 = vmatpush.bf16.msra.mxu3 %v1388_v29  ;;  %v1348_v29 = vor.u32 %v1537_v21, %v1345_v22  ;;  %v1558_v20 = vld [vmem:[#allocation7 + $0x48] sm:$0xff] }
  0x58   :  { %772 = vmatpush.bf16.msra.mxu0 %v1188_v37  ;;  %v1148_v37 = vor.u32 %v1487_v26, %v1145_v27  ;;  %v1557_v26 = vld [vmem:[#allocation7 + $0x40] sm:$0xff] }
  0x59   :  { %785 = vmatpush.bf16.msra.mxu1 %v1252_v38  ;;  %v1212_v38 = vor.u32 %v1503_v28, %v1209_v31 }
  0x5a   :  { %798 = vmatpush.bf16.msra.mxu2 %v1316_v39  ;;  %v1276_v39 = vor.u32 %v1519_v32, %v1273_v33 }
  0x5b   :  { %811 = vmatpush.bf16.msra.mxu3 %v1380_v43  ;;  %v1340_v43 = vor.u32 %v1535_v35, %v1337_v36 }
  0x5c   :  { %773 = vmatpush.bf16.msra.mxu0 %v1180_v49  ;;  %v1140_v49 = vor.u32 %v1485_v40, %v1137_v41 }
  0x5d   :  { %786 = vmatpush.bf16.msra.mxu1 %v1244_v50  ;;  %v1204_v50 = vor.u32 %v1501_v42, %v1201_v44 }
  0x5e   :  { %799 = vmatpush.bf16.msra.mxu2 %v1308_v51  ;;  %v1268_v51 = vor.u32 %v1517_v45, %v1265_v46 }
  0x5f   :  { %812 = vmatpush.bf16.msra.mxu3 %v1372_v55  ;;  %v1554_v55 = vld [vmem:[#allocation7 + $0x28] sm:$0xff] }
  0x60   :  { %774 = vmatpush.bf16.msra.mxu0 %v1172_v61 }
  0x61   :  { %787 = vmatpush.bf16.msra.mxu1 %v1236_v62  ;;  %v1563_v62 = vld [vmem:[#allocation7 + $0x70] sm:$0xff] }
  0x62   :  { %800 = vmatpush.bf16.msra.mxu2 %v1300_v5 }
  0x63   :  { %813 = vmatpush.bf16.msra.mxu3 %v1364_v2  ;;  %v1562_v2 = vld [vmem:[#allocation7 + $0x68] sm:$0xff] }
  0x64   :  { %775 = vmatpush.bf16.msra.mxu0 %v1164_v10 }
  0x65   :  { %788 = vmatpush.bf16.msra.mxu1 %v1228_v11 }
  0x66   :  { %801 = vmatpush.bf16.msra.mxu2 %v1292_v12  ;;  %v1560_v12 = vld [vmem:[#allocation7 + $0x58] sm:$0xff] }
  0x67   :  { %814 = vmatpush.bf16.msra.mxu3 %v1356_v16 }
  0x68   :  { %776 = vmatpush.bf16.msra.mxu0 %v1156_v23 }
  0x69   :  { %789 = vmatpush.bf16.msra.mxu1 %v1220_v24 }
  0x6a   :  { %802 = vmatpush.bf16.msra.mxu2 %v1284_v25 }
  0x6b   :  { %815 = vmatpush.bf16.msra.mxu3 %v1348_v29 }
  0x6c   :  { %777 = vmatpush.bf16.msra.mxu0 %v1148_v37 }
  0x6d   :  { %790 = vmatpush.bf16.msra.mxu1 %v1212_v38 }
  0x6e   :  { %803 = vmatpush.bf16.msra.mxu2 %v1276_v39 }
  0x6f   :  { %816 = vmatpush.bf16.msra.mxu3 %v1340_v43 }
  0x70   :  { %778 = vmatpush.bf16.msra.mxu0 %v1140_v49 }
  0x71   :  { %791 = vmatpush.bf16.msra.mxu1 %v1204_v50  ;;  %v986_v50 = vld [vmem:[%s1750_s5] sm:$0x1] }
  0x72   :  { %804 = vmatpush.bf16.msra.mxu2 %v1268_v51  ;;  %v1572_v51 = vld [vmem:[%s1749_s4] ss:$0 sm:$0xff] }
  0x73   :  { %817 = vmatpush.bf16.msra.mxu3 %v1332_v52  ;;  %779 = vmatmul.bf16.vlgmr.msra.gmra.mxu0 %v1714_v6  ;;  %v1549_v6 = vld [vmem:[#allocation7] sm:$0xff]  ;;  %v987_v52 = vunpack.c.l.bf16 %v986_v50 }
  0x74   :  { %959 = vmatpush.bf16.msrb.mxu0 %v1556_v53  ;;  %792 = vmatmul.bf16.vlgmr.msra.gmra.mxu1 %v1717_v18  ;;  %v181_v18 = vld [vmem:[%s1747_s2] sm:$0x3] }
  0x75   :  { %805 = vmatmul.bf16.vlgmr.msra.gmra.mxu2 %v1721_v30  ;;  %v183_v5 = vperm.slane %v181_v18, 0  ;;  %v184_v29 = vperm.slane %v181_v18, 1 }
  0x76   :  { %818 = vmatmul.bf16.vlgmr.msra.gmra.mxu3 %v1723_v34  ;;  %v1564_v34 = vld [vmem:[#allocation7 + $0x78] sm:$0xff] }
  0x77   :  { %972 = vmatpush.bf16.msrb.mxu1 %v1564_v34 }
  0x78   :  { %960 = vmatpush.bf16.msrb.mxu0 %v1555_v54 }
  0x7b   :  { %973 = vmatpush.bf16.msrb.mxu1 %v1563_v62 }
  0x7c   :  { %961 = vmatpush.bf16.msrb.mxu0 %v1554_v55 }
  0x7f   :  { %974 = vmatpush.bf16.msrb.mxu1 %v1562_v2 }
  0x80   :  { %962 = vmatpush.bf16.msrb.mxu0 %v1553_v56  ;;  %v988_v56 = vperm.slane %v987_v52, 0 }
  0x83   :  { %975 = vmatpush.bf16.msrb.mxu1 %v1561_v4 }
  0x84   :  { %963 = vmatpush.bf16.msrb.mxu0 %v1552_v58 }
  0x87   :  { %976 = vmatpush.bf16.msrb.mxu1 %v1560_v12 }
  0x88   :  { %964 = vmatpush.bf16.msrb.mxu0 %v1551_v59 }
  0x8b   :  { %977 = vmatpush.bf16.msrb.mxu1 %v1559_v14 }
  0x8c   :  { %965 = vmatpush.bf16.msrb.mxu0 %v1550_v57  ;;  %v1573_v57 = vld [vmem:[#allocation2] ss:$0 sm:$0xff] }
  0x8f   :  { %978 = vmatpush.bf16.msrb.mxu1 %v1558_v20 }
  0x90   :  { %966 = vmatpush.bf16.msrb.mxu0 %v1549_v6 }
  0x93   :  { %979 = vmatpush.bf16.msrb.mxu1 %v1557_v26 }
  0xb0   :  { %v676_v60 = vpop.f32.mrf.mxu0 }
  0xb1   :  { %v689_v61 = vpop.f32.mrf.mxu1  ;;  %v677_v3 = vadd.f32 %v676_v60, %v183_v5 }
  0xb3   :  { %v690_v7 = vadd.f32 %v689_v61, %v677_v3 }
  0xb8   :  { %v678_v30 = vpop.f32.mrf.mxu0  ;;  %v702_v63 = vpop.f32.mrf.mxu2 }
  0xb9   :  { %v691_v0 = vpop.f32.mrf.mxu1  ;;  %v715_v1 = vpop.f32.mrf.mxu3  ;;  %v703_v10 = vadd.f32 %v702_v63, %v690_v7 }
  0xbb   :  { %v716_v11 = vadd.f32 %v715_v1, %v703_v10 }
  0xc0   :  { %v704_v8 = vpop.f32.mrf.mxu2 }
  0xc1   :  { %v717_v9 = vpop.f32.mrf.mxu3 }
  0xd0   :  { %v728_v13 = vpop.f32.mrf.mxu0 }
  0xd1   :  { %v729_v15 = vadd.f32 %v728_v13, %v716_v11  ;;  %v741_v16 = vpop.f32.mrf.mxu1 }
  0xd3   :  { %v742_v17 = vadd.f32 %v741_v16, %v729_v15 }
  0xd5   :  { %v823_v19 = vmax.f32 %v742_v17, 0.0 }
  0xd7   :  { %v825_v21 = vpack.c.bf16 %v823_v19, %v823_v19 }
  0xd8   :  { %v754_v22 = vpop.f32.mrf.mxu2  ;;  %v730_v24 = vpop.f32.mrf.mxu0 }
  0xd9   :  { %v767_v23 = vpop.f32.mrf.mxu3  ;;  %967 = vmatmul.bf16.vlgmr.msrb.gmra.mxu0 %v825_v21  ;;  %v743_v25 = vpop.f32.mrf.mxu1  ;;  %v755_v31 = vadd.f32 %v754_v22, %v184_v29 }
  0xdb   :  { %v768_v32 = vadd.f32 %v767_v23, %v755_v31 }
  0xe0   :  { %v756_v27 = vpop.f32.mrf.mxu2 }
  0xe1   :  { %v769_v28 = vpop.f32.mrf.mxu3 }
  0xf0   :  { %v780_v33 = vpop.f32.mrf.mxu0 }
  0xf1   :  { %v793_v35 = vpop.f32.mrf.mxu1  ;;  %v781_v36 = vadd.f32 %v780_v33, %v768_v32 }
  0xf3   :  { %v794_v37 = vadd.f32 %v793_v35, %v781_v36 }
  0xf8   :  { %v806_v38 = vpop.f32.mrf.mxu2  ;;  %v782_v41 = vpop.f32.mrf.mxu0 }
  0xf9   :  { %v807_v39 = vadd.f32 %v806_v38, %v794_v37  ;;  %v819_v40 = vpop.f32.mrf.mxu3  ;;  %v795_v42 = vpop.f32.mrf.mxu1 }
  0xfb   :  { %v820_v43 = vadd.f32 %v819_v40, %v807_v39 }
  0xfd   :  { %v824_v44 = vmax.f32 %v820_v43, 0.0 }
  0xff   :  { %v826_v45 = vpack.c.bf16 %v824_v44, %v824_v44 }
 0x100   :  { %v808_v46 = vpop.f32.mrf.mxu2 }
 0x101   :  { %v821_v47 = vpop.f32.mrf.mxu3  ;;  %980 = vmatmul.bf16.vlgmr.msrb.gmra.mxu1 %v826_v45 }
 0x156   :  { %v968_v48 = vpop.f32.mrf.mxu0 }
 0x157   :  { %v969_v53 = vadd.f32 %v1572_v51, %v968_v48 }
 0x15e   :  { %v970_v49 = vpop.f32.mrf.mxu0 }
 0x17e   :  { %v981_v54 = vpop.f32.mrf.mxu1 }
 0x17f   :  { %v982_v55 = vadd.f32 %v981_v54, %v969_v53 }
 0x181   :  { %v985_v58 = vmax.f32 %v982_v55, 0.0 }
 0x183   :  { %v989_v59 = vmul.f32 %v988_v56, %v985_v58 }
 0x185   :  { %990 = vadd.xlane.f32.xlu0 %v989_v59 }
 0x186   :  { %v983_v60 = vpop.f32.mrf.mxu1 }
 0x1f8   :  { %v991_v61 = vpop.xlane.xlu0 %990 }
 0x1f9   :  { %v996_v6 = vadd.f32 %v1573_v57, %v991_v61 }
 0x1fb   :  { %998 = vst.msk [vmem:[%s1752_s7] sm:$0xff] %vm997_vm0, %v996_v6 }
 0x1fc   :  { %1003 = vsyncpa [#allocation4], 1 }
 0x1fd   :  { %1004 = vsyncpa [#allocation6], 1 }

</bundles_post_ra>
